<compile_context>
chip_gen: v7x
topology: tpu7x:2x2x1
jax: 0.10.0
libtpu: 0.0.40
codegen_flags: <defaults>
</compile_context>

<pallas_src>
import jax
import jax.numpy as jnp
from jax.experimental import pallas as pl
from jax.experimental.pallas import tpu as pltpu

_LANES = 128


def _normalize_kernel(mean_ref, inv_std_ref, img_ref, out_ref):
    # mean_ref / inv_std_ref: SMEM (C,) f32 scalars.
    # img_ref / out_ref:      VMEM (R, 128) tile of one channel's pixels.
    c = pl.program_id(0)
    m = mean_ref[c]
    inv_s = inv_std_ref[c]
    out_ref[...] = ((img_ref[...] - m) * inv_s).astype(out_ref.dtype)


def _round_up(x, m):
    return ((x + m - 1) // m) * m


def _pick_row_tile(rows, *, r_min=64, r_max=2048, target_tiles=4):
    """Sublane tile R: multiple of 8, ~target_tiles even steps, >=8K lanes/step."""
    if rows <= r_min:
        return rows                      # single full-dim block (always legal)
    r = pl.cdiv(rows, target_tiles)
    r = max(r_min, min(r_max, r))
    r = _round_up(r, 8)
    if r >= rows:
        return rows
    return r


def normalization_forward(img, mean, std, out_dtype=None):
    """img: (C, H, W); mean, std: (C,)  ->  (1, C, H, W) = ((img-mean)/std)[None]."""
    C, H, W = img.shape
    HW = H * W
    dtype = img.dtype if out_dtype is None else out_dtype

    hw_pad = _round_up(HW, _LANES)
    rows = hw_pad // _LANES
    R = _pick_row_tile(rows)
    n_row_tiles = pl.cdiv(rows, R)

    x = img.reshape(C, HW)
    if hw_pad != HW:
        # Only for spatial sizes that aren't a multiple of 128 lanes.
        x = jnp.pad(x, ((0, 0), (0, hw_pad - HW)))
    x3 = x.reshape(C, rows, _LANES)          # metadata-only for contiguous input

    mean_s = mean.astype(jnp.float32).reshape(C)
    inv_std_s = (1.0 / std.astype(jnp.float32)).reshape(C)

    out3 = pl.pallas_call(
        _normalize_kernel,
        out_shape=jax.ShapeDtypeStruct((C, rows, _LANES), dtype),
        grid_spec=pl.GridSpec(
            grid=(C, n_row_tiles),
            in_specs=[
                pl.BlockSpec(memory_space=pltpu.MemorySpace.SMEM),   # mean  (C,)
                pl.BlockSpec(memory_space=pltpu.MemorySpace.SMEM),   # 1/std (C,)
                pl.BlockSpec((pl.Squeezed(), R, _LANES), lambda c, i: (c, i, 0)),
            ],
            out_specs=pl.BlockSpec((pl.Squeezed(), R, _LANES),
                                   lambda c, i: (c, i, 0)),
        ),
        compiler_params=pltpu.CompilerParams(
            dimension_semantics=("parallel", "parallel"),  # disjoint output tiles
        ),
    )(mean_s, inv_std_s, x3)

    out2 = out3.reshape(C, hw_pad)
    if hw_pad != HW:
        out2 = out2[:, :HW]
    # unsqueeze(0): metadata-only reshape in the wrapper.
    return out2.reshape(1, C, H, W)


def normalization_ref(img, mean, std):
    # Pure-JAX reference matching the PyTorch forward (true divide).
    return ((img - mean[:, None, None]) / std[:, None, None])[None]


if __name__ == "__main__":
    mean = jnp.array([0.485, 0.456, 0.406], dtype=jnp.float32)
    std = jnp.array([0.229, 0.224, 0.225], dtype=jnp.float32)

    key = jax.random.PRNGKey(0)
    k1, k2, k3 = jax.random.split(key, 3)

    # Small CHW image; HW = 256 is a lane multiple -> zero-copy layout path.
    img = jax.random.uniform(k1, (3, 16, 16), dtype=jnp.float32)
    out = jax.block_until_ready(normalization_forward(img, mean, std))
    ref = normalization_ref(img, mean, std)
    assert out.shape == (1, 3, 16, 16), out.shape
    assert jnp.allclose(out, ref, atol=1e-5, rtol=1e-5), "mismatch vs reference"

    # Spatial size not a multiple of 128 -> padded path.
    img2 = jax.random.uniform(k2, (3, 17, 17), dtype=jnp.float32)
    out2 = jax.block_until_ready(normalization_forward(img2, mean, std))
    ref2 = normalization_ref(img2, mean, std)
    assert out2.shape == (1, 3, 17, 17), out2.shape
    assert jnp.allclose(out2, ref2, atol=1e-5, rtol=1e-5), "mismatch (odd HW)"

    # Larger spatial size -> multi-row-tile grid (exercises the pipelined path).
    img3 = jax.random.uniform(k3, (3, 96, 96), dtype=jnp.float32)
    out3 = jax.block_until_ready(normalization_forward(img3, mean, std))
    ref3 = normalization_ref(img3, mean, std)
    assert out3.shape == (1, 3, 96, 96), out3.shape
    assert jnp.allclose(out3, ref3, atol=1e-5, rtol=1e-5), "mismatch (multi-tile)"

    print("KERNEL_OK")
</pallas_src>

<mosaic_0001>
module attributes {stable_mosaic.version = 11 : i64} {
  func.func @_normalize_kernel(%arg0: i32, %arg1: i32, %arg2: memref<3xf32, #tpu.memory_space<smem>>, %arg3: memref<3xf32, #tpu.memory_space<smem>>, %arg4: memref<1x2x128xf32, #tpu.memory_space<vmem>>, %arg5: memref<1x2x128xf32, #tpu.memory_space<vmem>>) attributes {dimension_semantics = [#tpu.dimension_semantics<parallel>, #tpu.dimension_semantics<parallel>], iteration_bounds = array<i64: 3, 1>, scalar_prefetch = 0 : i64, scratch_operands = 0 : i64, tpu.core_type = #tpu.core_type<tc>, window_params = [{transform_indices = @transform_0, window_bounds = array<i64: 3>}, {transform_indices = @transform_1, window_bounds = array<i64: 3>}, {transform_indices = @transform_2, window_bounds = array<i64: 1, 2, 128>}, {transform_indices = @transform_3, window_bounds = array<i64: 1, 2, 128>}]} {
    %0 = arith.index_cast %arg0 : i32 to index
    %1 = memref.load %arg2[%0] : memref<3xf32, #tpu.memory_space<smem>>
    %2 = arith.index_cast %arg0 : i32 to index
    %3 = memref.load %arg3[%2] : memref<3xf32, #tpu.memory_space<smem>>
    %c0 = arith.constant 0 : index
    %c0_0 = arith.constant 0 : index
    %c0_1 = arith.constant 0 : index
    %4 = vector.load %arg4[%c0, %c0_0, %c0_1] : memref<1x2x128xf32, #tpu.memory_space<vmem>>, vector<1x2x128xf32>
    %5 = vector.shape_cast %4 : vector<1x2x128xf32> to vector<2x128xf32>
    %6 = vector.broadcast %1 : f32 to vector<2x128xf32>
    %7 = arith.subf %5, %6 : vector<2x128xf32>
    %8 = vector.broadcast %3 : f32 to vector<2x128xf32>
    %9 = arith.mulf %7, %8 : vector<2x128xf32>
    %c0_2 = arith.constant 0 : index
    %c0_3 = arith.constant 0 : index
    %c0_4 = arith.constant 0 : index
    %10 = vector.load %arg5[%c0_2, %c0_3, %c0_4] : memref<1x2x128xf32, #tpu.memory_space<vmem>>, vector<1x2x128xf32>
    %11 = vector.shape_cast %10 : vector<1x2x128xf32> to vector<2x128xf32>
    %12 = vector.shape_cast %9 : vector<2x128xf32> to vector<1x2x128xf32>
    tpu.vector_store %arg5[%c0_2, %c0_3, %c0_4], %12 {strides = array<i32>} : memref<1x2x128xf32, #tpu.memory_space<vmem>>, vector<1x2x128xf32>,
    return
  }
  func.func @transform_0(%arg0: i32, %arg1: i32) -> i32 {
    %c0_i32 = arith.constant 0 : i32
    %c0_i32_0 = arith.constant 0 : i32
    return %c0_i32 : i32
  }
  func.func @transform_1(%arg0: i32, %arg1: i32) -> i32 {
    %c0_i32 = arith.constant 0 : i32
    %c0_i32_0 = arith.constant 0 : i32
    return %c0_i32 : i32
  }
  func.func @transform_2(%arg0: i32, %arg1: i32) -> (i32, i32, i32) {
    %c0_i32 = arith.constant 0 : i32
    %c0_i32_0 = arith.constant 0 : i32
    return %arg0, %arg1, %c0_i32 : i32, i32, i32
  }
  func.func @transform_3(%arg0: i32, %arg1: i32) -> (i32, i32, i32) {
    %c0_i32 = arith.constant 0 : i32
    %c0_i32_0 = arith.constant 0 : i32
    return %arg0, %arg1, %c0_i32 : i32, i32, i32
  }
}

</mosaic_0001>

<bundles_post_ra>
// kernel: tpu_custom_call.1
= control target key start
LH: loop header
LB: loop body
LE: loop exit
PB: predicated region body
PF: predicated region fallthrough
CT: control target
= control target key end

     0   :  { %8 = vsyncpa [#allocation4], 0  ;;  %s725_s0 = inlined_call_operand.hbm [shape: f32[3], index: 0, kind: input, shape index: {}]   ;;  %s726_s1 = inlined_call_operand.vmem [shape: f32[3], index: 1, kind: input, shape index: {}]   ;;  %s727_s2 = inlined_call_operand.vmem [shape: f32[3,2,128], index: 2, kind: input, shape index: {}]   ;;  %s728_s3 = inlined_call_operand.hbm [shape: f32[3,2,128], index: 3, kind: output, shape index: {}]  }
   0x1   :  { %9 = vsyncpa [#allocation5], 0 }
   0x2   :  { %10 = vsyncpa [#allocation3], 0 }
   0x3   :  { %12 = vsyncpa [#allocation3 + $0x1], 0  ;;  %s564_s12 = smov 0   ;;  %s566_s13 = smov 0  }
   0x4   :  { %s568_s14 = smov 0   ;;  %s570_s15 = smov 0  }
   0x5   :  { %s572_s16 = smov 0   ;;  %s574_s17 = smov 0  }
   0x6 LB: > { %s334_s18 = sadd.s32 4294967295, %s539_s17   ;;  %s335_s19 = sadd.s32 4294967294, %s539_s17   ;;  %s539_s17 = sphi %s574_s17, %s18_s17   ;;  %s535_s16 = sphi %s572_s16, %s741_s16   ;;  %s531_s15 = sphi %s570_s15, %s740_s15   ;;  %s527_s14 = sphi %s568_s14, %s739_s14   ;;  %s523_s13 = sphi %s566_s13, %s738_s13   ;;  %s519_s12 = sphi %s564_s12, %s737_s12  }
   0x7   : > { %s30_s20 = sadd.s32 1, %s535_s16  ;;  %s109_s21 = sadd.s32 1, %s527_s14 }
   0x8   : > { %p32_p0 = scmp.ge.s32.totalorder %s30_s20, 3  ;;  %p119_p1 = scmp.ne.s32.totalorder %s527_s14, %s523_s13 }
   0x9   : > { %p120_p2 = scmp.eq.s32.totalorder %s334_s18, 2  ;;  %p125_p3 = scmp.ne.s32.totalorder %s523_s13, %s519_s12 }
   0xa   : > { %s743_s20 = smov (%p32_p0, %s30_s20), 0  ;;  %p126_p5 = scmp.eq.s32.totalorder %s335_s19, 2 }
   0xb   : > { %p604_p4 = por %p120_p2, %p119_p1  ;;  %s104_s23 = ssub.s32 %s535_s16, %s743_s20 }
   0xc   : > { %p336_p6 = scmp.ge.s32.totalorder %s539_s17, 1  ;;  %p107_p7 = scmp.eq.s32.totalorder %s104_s23, 0 }
   0xd   : > { %s730_s22 = scalar_select %p604_p4, 1, 0 }
   0xe   : > { %p611_p8 = por %p126_p5, %p125_p3  ;;  %p133_p9 = scmp.lt.s32.totalorder %s539_s17, 4 }
   0xf   : > { %s617_s25 = scalar_select %p107_p7, %s527_s14, %s109_s21  }
  0x10   : > { %s731_s24 = scalar_select %p611_p8, 1, 0 }
  0x11   : > { %p619_p10 = pnand %p336_p6, %p133_p9  ;;  %p623_p11 = scmp.eq.s32.totalorder %s334_s18, 0 }
  0x12   : > { %s155_s30 = sshll.u32 %s726_s1, 4  ;;  %s425_s7 = scalar_lea.hbm %s725_s0, 16  ;;  %s156_s30 = int_to_ptr.vmem [resolvable:$true] %s155_s30 }
  0x13   : > { %p359_p12 = pneg %p619_p10  ;;  %p426_p0 = scmp.ne.s32.totalorder %s725_s0, %s425_s7 }
  0x14   : > { %p432_p5 = scmp.lt.u32.totalorder %s425_s7, %s725_s0 }
  0x15   : > { %p634_p13 = pnand %p623_p11, %p359_p12 }
  0x17   : > { %p427_p1 = pneg %p634_p13 }
  0x19   : > { %p428_p2 = pnand %p427_p1, %p426_p0 }
  0x1b   : > { %p429_p3 = pneg %p428_p2 }
  0x1d   : > { %p434_p6 = pnand %p432_p5, %p429_p3 }
  0x1f   : > { %437 = shalt.err (!%p434_p6)
}
  0x20   : > { %s541_s18 = smov [#allocation2]   ;;  %s438_s23 = scalar_lea.vmem %s156_s30, 16 }
  0x21   : > { %362 = dma.hbm_to_smem (!%p634_p13), %s725_s0, 16, %s541_s18, [#allocation4]  }
  0x22   : > { %p439_p7 = scmp.ne.s32.totalorder %s156_s30, %s438_s23  ;;  %p446_p8 = scmp.lt.s32.totalorder %s156_s30, %s156_s30 }
  0x23   : > { %p447_p0 = scmp.lt.s32.totalorder %s438_s23, %s438_s23 }
  0x24   : > { %p441_p9 = pnand %p439_p7, %p427_p1 }
  0x25   : > { %p448_p2 = por %p447_p0, %p446_p8 }
  0x26   : > { %p442_p12 = pneg %p441_p9 }
  0x28   : > { %p449_p4 = pnand %p448_p2, %p442_p12 }
  0x2a   : > { %452 = shalt.err (!%p449_p4)
}
  0x2b   : > { %s542_s28 = smov [#allocation6]   ;;  %178 = sbr.rel (%p619_p10) target bundleno = 85 (0x55), region = 32 }
  0x2c   : > { %365 = dma.vmem_to_smem (!%p634_p13), %s156_s30, 16, %s542_s28, [#allocation5]  }
  0x32   : > { %506 = dma.done.wait (%p623_p11), [#allocation4], 16  }
  0x33   : > { %508 = vsyncadd (%p623_p11), [#allocation4], 4294967280 }
  0x34   : > { %510 = dma.done.wait (%p623_p11), [#allocation5], 16  }
  0x35   : > { %512 = vsyncadd (%p623_p11), [#allocation5], 4294967280 }
  0x36   : > { %188 = sfence }
  0x37   : > { %s206_s26 = sand.u32 1, %s523_s13   ;;  %p209_p4 = scmp.lt.s32.totalorder %s531_s15, 2 }
  0x38   : > { %s343_s29 = sshll.u32 %s206_s26, 1  ;;  %s216_s30 = sld [smem:[#allocation2 + %s531_s15]] }
  0x39   : > { %s217_s4 = sld [smem:[#allocation6 + %s531_s15]]  ;;  %s208_s9 = scalar_lea.vmem [#allocation7], %s343_s29 }
  0x3a   : > { %s210_s5 = scalar_select %p209_p4, %s531_s15, 2 }
  0x3b   : > { %s239_s10 = sshll.u32 %s208_s9, 4  ;;  %s346_s11 = sshll.u32 %s531_s15, 5  ;;  %s675_s10 = int_to_ptr.vmem [resolvable:$true] %s239_s10 }
  0x3c   : > { %s344_s6 = sshll.u32 %s210_s5, 1  ;;  %s680_s21 = scalar_lea.hbm %s728_s3, %s346_s11 }
  0x3d   : > { %s215_s27 = scalar_lea.vmem %s727_s2, %s344_s6  ;;  %s225_s23 = scalar_lea.sflag [#allocation3], %s206_s26 }
  0x3e   : > { %v218_v0 = vld [vmem:[%s215_s27] sm:$0x3]  ;;  %v219_v1 = vstv %s216_s30  ;;  %s453_s28 = scalar_lea.vmem %s675_s10, 32  ;;  %p735_p10 = scmp.ne.s32.totalorder %s730_s22, 0 }
  0x3f   : > { %v220_v2 = vsub.f32 %v218_v0, %v219_v1  ;;  %v221_v3 = vstv %s217_s4  ;;  %p454_p8 = scmp.ne.s32.totalorder %s675_s10, %s453_s28  ;;  %s543_s15 = smov [#allocation7]  }
  0x40   : > { %s457_s29 = sshll.u32 %s543_s15, 4  ;;  %s458_s29 = int_to_ptr.vmem [resolvable:$false] %s457_s29 }
  0x41   : > { %v222_v4 = vmul.f32 %v221_v3, %v220_v2  ;;  %p455_p11 = pnand %p454_p8, %p735_p10  ;;  %s459_s30 = scalar_lea.vmem %s458_s29, 64 }
  0x42   : > { %p460_p1 = scmp.lt.s32.totalorder %s675_s10, %s458_s29  ;;  %p461_p3 = scmp.lt.s32.totalorder %s459_s30, %s453_s28 }
  0x43   : > { %223 = vst [vmem:[%s208_s9] sm:$0x3] %v222_v4  ;;  %p456_p13 = pneg %p455_p11 }
  0x44   : > { %p462_p5 = por %p461_p3, %p460_p1 }
  0x46   : > { %p463_p6 = pnand %p462_p5, %p456_p13 }
  0x48   : > { %466 = shalt.err (!%p463_p6)
}
  0x49   : > { %s467_s26 = scalar_lea.hbm %s680_s21, 32  ;;  %s471_s6 = scalar_lea.hbm %s728_s3, 96 }
  0x4a   : > { %p468_p7 = scmp.ne.s32.totalorder %s680_s21, %s467_s26  ;;  %p472_p0 = scmp.lt.u32.totalorder %s680_s21, %s728_s3 }
  0x4b   : > { %p473_p2 = scmp.lt.u32.totalorder %s471_s6, %s467_s26  ;;  %p475_p8 = scmp.lt.u32.totalorder %s467_s26, %s680_s21 }
  0x4c   : > { %p469_p9 = pnand %p468_p7, %p735_p10 }
  0x4d   : > { %p474_p4 = por %p473_p2, %p472_p0 }
  0x4e   : > { %p470_p12 = pneg %p469_p9 }
  0x4f   : > { %p476_p11 = por %p475_p8, %p474_p4 }
  0x51   : > { %p477_p13 = pnand %p476_p11, %p470_p12 }
  0x53   : > { %480 = shalt.err (!%p477_p13)
}
  0x54   : > { %357 = dma.vmem_to_hbm [thread:$0]  (%p735_p10), %s675_s10, 32, %s680_s21, %s225_s23  }
  0x55 PF: > { %p374_p1 = scmp.ge.s32.totalorder %s539_s17, 2  ;;  %s251_s27 = sand.u32 1, %s519_s12  }
  0x56   : > { %p736_p3 = scmp.ne.s32.totalorder %s731_s24, 0  ;;  %s252_s9 = scalar_lea.sflag [#allocation3], %s251_s27 }
  0x58   : > { %p367_p5 = pnand %p374_p1, %p736_p3 }
  0x5a   : > { %514 = dma.done.wait (!%p367_p5), %s252_s9, 32  }
  0x5b   : > { %516 = vsyncadd (!%p367_p5), %s252_s9, 4294967264  ;;  %s18_s17 = sadd.s32 1, %s539_s17   ;;  %s737_s12 = smov %s523_s13 }
  0x5c   : > { %p15_p6 = scmp.ge.s32.totalorder %s18_s17, 5   ;;  %s738_s13 = smov %s527_s14 }
  0x5d   : > { %s739_s14 = smov %s617_s25  ;;  %s740_s15 = smov %s535_s16 }
  0x5e   : > { %s741_s16 = smov %s743_s20  ;;  %17 = sbr.rel (!%p15_p6) target bundleno = 6 (0x6), region = 77 }
  0x65   :  { %257 = vsyncpa [#allocation3], 1 }
  0x66   :  { %259 = vsyncpa [#allocation3 + $0x1], 1 }
  0x67   :  { %260 = vsyncpa [#allocation4], 1 }
  0x68   :  { %262 = vsyncpa [#allocation4 + $0x1], 1 }
  0x69   :  { %263 = vsyncpa [#allocation5], 1 }
  0x6a   :  { %265 = vsyncpa [#allocation5 + $0x1], 1 }

</bundles_post_ra>
